<compile_context>
chip_gen: v7x
topology: tpu7x:2x2x1
jax: 0.10.0
libtpu: 0.0.40
codegen_flags: <defaults>
</compile_context>

<pallas_src>
import math

import jax
import jax.numpy as jnp
from jax.experimental import pallas as pl
from jax.experimental.pallas import tpu as pltpu

_LOG_2PI = math.log(2.0 * math.pi)
_LANES = 512                            # lane-dense slab width (multiple of 128)
_TILE_TARGET_BYTES = 4 * 1024 * 1024    # ~4 MiB per input tile
_VMEM_LIMIT_BYTES = 40 * 1024 * 1024    # 3 inputs x 2 bufs x 4 MiB + headroom (< v7x 64 MiB)


def _ll_partial_kernel(muy_ref, sdy_ref, ty_ref, out_ref, acc_ref):
    """Accumulates sum of  -0.5*((t-mu)/sigma)^2 - log(sigma)  over row tiles.

    grid = (num_cores, tiles_per_core); axis 0 is "parallel" (megacore split on
    v7x), axis 1 is the sequential reduction.  Each core accumulates into its
    own VMEM scratch and writes one (8, 128) output block at the end.
    """
    i = pl.program_id(1)

    @pl.when(i == 0)
    def _init():
        acc_ref[...] = jnp.zeros_like(acc_ref)

    # Compute in f32 regardless of input dtype (v5e has no bf16 VPU/EUP path).
    muy = muy_ref[...].astype(jnp.float32)
    sdy = sdy_ref[...].astype(jnp.float32)
    ty = ty_ref[...].astype(jnp.float32)

    # EUP approx reciprocal + one Newton refinement step on the VPU.
    inv = pl.reciprocal(sdy, approx=True)
    inv = inv * (2.0 - sdy * inv)
    z = (ty - muy) * inv
    term = -0.5 * (z * z) - jnp.log(sdy)      # -0.5*log(2*pi) hoisted to wrapper

    s = jnp.sum(term, axis=1, keepdims=True)  # lanes -> [TR, 1]
    s = jnp.sum(s, axis=0, keepdims=True)     # rows  -> [1, 1]
    acc_ref[...] += s                         # broadcast add into (8,128) scratch

    @pl.when(i == pl.num_programs(1) - 1)
    def _final():
        out_ref[...] = acc_ref[...]


def _round_up(x, m):
    return ((x + m - 1) // m) * m


def _plan(n_elements, itemsize):
    """Choose (num_cores, tiles_per_core, tile_rows, total_rows) for the slab."""
    rows = _round_up(max(1, pl.cdiv(n_elements, _LANES)), 8)
    target_rows = max(8, (_TILE_TARGET_BYTES // (_LANES * itemsize)) // 8 * 8)
    num_cores = 2 if rows >= 16 else 1                 # use both TCs on v7x
    tiles = _round_up(max(pl.cdiv(rows, target_rows), num_cores), num_cores)
    tile_rows = _round_up(pl.cdiv(rows, tiles), 8)
    return num_cores, tiles // num_cores, tile_rows, tiles * tile_rows


def _flat_pad(x, total_elems, pad_value):
    flat = jnp.ravel(x)
    pad = total_elems - flat.shape[0]
    if pad:
        flat = jnp.concatenate(
            [flat, jnp.full((pad,), pad_value, dtype=flat.dtype)])
    return flat.reshape(total_elems // _LANES, _LANES)


def gaussian_loglikelihood_mean(mu_y, sigma_y, target_y):
    """Normal(mu, sigma).log_prob(t).sum(-1).sum(-1).mean() via Pallas."""
    B = mu_y.shape[0]
    per_task_elems = 1
    for d in mu_y.shape[1:]:
        per_task_elems *= d
    n = B * per_task_elems

    itemsize = jnp.dtype(mu_y.dtype).itemsize
    num_cores, tiles_per_core, tile_rows, total_rows = _plan(n, itemsize)
    total_elems = total_rows * _LANES

    # Pad values (mu=0, sigma=1, t=0) contribute exactly 0 to the kernel sum
    # because the -0.5*log(2*pi) constant is added analytically below.
    # Inputs are NOT cast in the wrapper: stream native dtype, upcast in-kernel.
    muy2 = _flat_pad(mu_y, total_elems, 0)
    sdy2 = _flat_pad(sigma_y, total_elems, 1)
    ty2 = _flat_pad(target_y, total_elems, 0)

    y_spec = pl.BlockSpec((tile_rows, _LANES),
                          lambda c, i: (c * tiles_per_core + i, 0))
    out_spec = pl.BlockSpec((8, 128), lambda c, i: (c, 0))

    partials = pl.pallas_call(
        _ll_partial_kernel,
        out_shape=jax.ShapeDtypeStruct((num_cores * 8, 128), jnp.float32),
        grid_spec=pltpu.PrefetchScalarGridSpec(
            num_scalar_prefetch=0,
            grid=(num_cores, tiles_per_core),
            in_specs=[y_spec, y_spec, y_spec],
            out_specs=out_spec,
            scratch_shapes=[pltpu.VMEM((8, 128), jnp.float32)]),
        compiler_params=pltpu.CompilerParams(
            dimension_semantics=("parallel", "arbitrary"),
            vmem_limit_bytes=_VMEM_LIMIT_BYTES),
    )(muy2, sdy2, ty2)

    # One partial per core, replicated across its (8,128) block; take lane 0.
    total = jnp.sum(partials[::8, 0])
    return total / B - 0.5 * _LOG_2PI * per_task_elems


def kl_normal_mean(mu_q, sigma_q, mu_p, sigma_p):
    """KL(N(mu_q,sig_q) || N(mu_p,sig_p)).sum(axis=1).mean() -- tiny, plain jnp."""
    mu_q = mu_q.astype(jnp.float32)
    sigma_q = sigma_q.astype(jnp.float32)
    mu_p = mu_p.astype(jnp.float32)
    sigma_p = sigma_p.astype(jnp.float32)
    var_ratio = jnp.square(sigma_q / sigma_p)
    t1 = jnp.square((mu_q - mu_p) / sigma_p)
    kl = 0.5 * (var_ratio + t1 - 1.0 - jnp.log(var_ratio))
    return kl.sum(axis=1).mean()


def elbo_loss_forward(mu_y, sigma_y, target_y,
                      mu_q=None, sigma_q=None, mu_p=None, sigma_p=None,
                      kld_additional=None):
    """Mirror of elbo_loss.forward for the non-IWAE paths.

    Returns (loss, log_likelihood, kld, kld_additional)."""
    # TODO(synk): is_iwae branch (logsumexp over an importance-sample axis) and
    # the host-side torch.isnan check are not wired through the Pallas kernel.
    ll = gaussian_loglikelihood_mean(mu_y, sigma_y, target_y)
    has_z = mu_q is not None and mu_p is not None
    kl = kl_normal_mean(mu_q, sigma_q, mu_p, sigma_p) if has_z else None

    loss = -ll
    if has_z:
        loss = loss + kl
    if kld_additional is not None:
        loss = loss + kld_additional
    return loss, ll, kl, kld_additional


def _reference(mu_y, sigma_y, target_y, mu_q, sigma_q, mu_p, sigma_p):
    logp = (-0.5 * ((target_y - mu_y) / sigma_y) ** 2
            - jnp.log(sigma_y) - 0.5 * _LOG_2PI)
    ll = logp.sum(-1).sum(-1).mean()
    var_ratio = (sigma_q / sigma_p) ** 2
    t1 = ((mu_q - mu_p) / sigma_p) ** 2
    kl = (0.5 * (var_ratio + t1 - 1.0 - jnp.log(var_ratio))).sum(axis=1).mean()
    return -ll + kl, ll, kl


if __name__ == "__main__":
    # tasks, points, y_dim, z_dim — small, but large enough to exercise the
    # two-core grid split and the lane-dense tiling path.
    B, N, D, Z = 8, 64, 16, 32
    key = jax.random.PRNGKey(0)
    k = jax.random.split(key, 7)

    mu_y = jax.random.normal(k[0], (B, N, D), jnp.float32)
    sigma_y = jax.nn.softplus(jax.random.normal(k[1], (B, N, D), jnp.float32)) + 0.1
    target_y = jax.random.normal(k[2], (B, N, D), jnp.float32)
    mu_q = jax.random.normal(k[3], (B, Z), jnp.float32)
    sigma_q = jax.nn.softplus(jax.random.normal(k[4], (B, Z), jnp.float32)) + 0.1
    mu_p = jax.random.normal(k[5], (B, Z), jnp.float32)
    sigma_p = jax.nn.softplus(jax.random.normal(k[6], (B, Z), jnp.float32)) + 0.1

    loss, ll, kl, _ = elbo_loss_forward(mu_y, sigma_y, target_y,
                                        mu_q, sigma_q, mu_p, sigma_p)
    loss = jax.block_until_ready(loss)

    ref_loss, ref_ll, ref_kl = _reference(mu_y, sigma_y, target_y,
                                          mu_q, sigma_q, mu_p, sigma_p)

    # Likelihood uses the (Newton-refined) approx reciprocal -> slightly loose tol.
    assert jnp.allclose(ll, ref_ll, rtol=1e-3, atol=1e-3), (ll, ref_ll)
    assert jnp.allclose(kl, ref_kl, rtol=1e-5, atol=1e-5), (kl, ref_kl)
    assert jnp.allclose(loss, ref_loss, rtol=1e-3, atol=1e-3), (loss, ref_loss)

    # No-z branch: loss == -log_likelihood, kld is None.
    loss2, ll2, kl2, _ = elbo_loss_forward(mu_y, sigma_y, target_y)
    loss2 = jax.block_until_ready(loss2)
    assert kl2 is None
    assert jnp.allclose(loss2, -ll2, rtol=1e-6, atol=1e-6), (loss2, ll2)

    print("KERNEL_OK")
</pallas_src>

<mosaic_0001>
module attributes {stable_mosaic.version = 11 : i64} {
  func.func @_ll_partial_kernel(%arg0: i32, %arg1: i32, %arg2: memref<8x512xf32, #tpu.memory_space<vmem>>, %arg3: memref<8x512xf32, #tpu.memory_space<vmem>>, %arg4: memref<8x512xf32, #tpu.memory_space<vmem>>, %arg5: memref<8x128xf32, #tpu.memory_space<vmem>>, %arg6: memref<8x128xf32, #tpu.memory_space<vmem>>) attributes {dimension_semantics = [#tpu.dimension_semantics<parallel>, #tpu.dimension_semantics<arbitrary>], iteration_bounds = array<i64: 2, 1>, scalar_prefetch = 0 : i64, scratch_operands = 1 : i64, tpu.core_type = #tpu.core_type<tc>, window_params = [{transform_indices = @transform_0, window_bounds = array<i64: 8, 512>}, {transform_indices = @transform_1, window_bounds = array<i64: 8, 512>}, {transform_indices = @transform_2, window_bounds = array<i64: 8, 512>}, {transform_indices = @transform_3, window_bounds = array<i64: 8, 128>}]} {
    %c0_i32 = arith.constant 0 : i32
    %0 = arith.cmpi eq, %arg1, %c0_i32 : i32
    %1 = arith.extui %0 : i1 to i32
    %c0_i32_0 = arith.constant 0 : i32
    %2 = arith.cmpi ne, %1, %c0_i32_0 : i32
    scf.if %2 {
      %cst_15 = arith.constant 0.000000e+00 : f32
      %29 = vector.broadcast %cst_15 : f32 to vector<8x128xf32>
      %c0_16 = arith.constant 0 : index
      %c0_17 = arith.constant 0 : index
      %30 = vector.load %arg6[%c0_16, %c0_17] : memref<8x128xf32, #tpu.memory_space<vmem>>, vector<8x128xf32>
      tpu.vector_store %arg6[%c0_16, %c0_17], %29 {strides = array<i32>} : memref<8x128xf32, #tpu.memory_space<vmem>>, vector<8x128xf32>,
    } else {
    }
    %c0 = arith.constant 0 : index
    %c0_1 = arith.constant 0 : index
    %3 = vector.load %arg2[%c0, %c0_1] : memref<8x512xf32, #tpu.memory_space<vmem>>, vector<8x512xf32>
    %c0_2 = arith.constant 0 : index
    %c0_3 = arith.constant 0 : index
    %4 = vector.load %arg3[%c0_2, %c0_3] : memref<8x512xf32, #tpu.memory_space<vmem>>, vector<8x512xf32>
    %c0_4 = arith.constant 0 : index
    %c0_5 = arith.constant 0 : index
    %5 = vector.load %arg4[%c0_4, %c0_5] : memref<8x512xf32, #tpu.memory_space<vmem>>, vector<8x512xf32>
    %6 = tpu.reciprocal %4 {approx = true} : vector<8x512xf32> -> vector<8x512xf32>
    %7 = arith.mulf %4, %6 : vector<8x512xf32>
    %cst = arith.constant 2.000000e+00 : f32
    %8 = vector.broadcast %cst : f32 to vector<8x512xf32>
    %9 = arith.subf %8, %7 : vector<8x512xf32>
    %10 = arith.mulf %6, %9 : vector<8x512xf32>
    %11 = arith.subf %5, %3 : vector<8x512xf32>
    %12 = arith.mulf %11, %10 : vector<8x512xf32>
    %13 = arith.mulf %12, %12 : vector<8x512xf32>
    %cst_6 = arith.constant -5.000000e-01 : f32
    %14 = vector.broadcast %cst_6 : f32 to vector<8x512xf32>
    %15 = arith.mulf %14, %13 : vector<8x512xf32>
    %16 = math.log %4 : vector<8x512xf32>
    %17 = arith.subf %15, %16 : vector<8x512xf32>
    %cst_7 = arith.constant dense<0.000000e+00> : vector<8xf32>
    %18 = vector.multi_reduction <add>, %17, %cst_7 [1] : vector<8x512xf32> to vector<8xf32>
    %19 = vector.shape_cast %18 : vector<8xf32> to vector<8x1xf32>
    %cst_8 = arith.constant dense<0.000000e+00> : vector<1xf32>
    %20 = vector.multi_reduction <add>, %19, %cst_8 [0] : vector<8x1xf32> to vector<1xf32>
    %21 = vector.shape_cast %20 : vector<1xf32> to vector<1x1xf32>
    %c0_9 = arith.constant 0 : index
    %c0_10 = arith.constant 0 : index
    %22 = vector.load %arg6[%c0_9, %c0_10] : memref<8x128xf32, #tpu.memory_space<vmem>>, vector<8x128xf32>
    %23 = vector.broadcast %21 : vector<1x1xf32> to vector<8x128xf32>
    %24 = arith.addf %22, %23 : vector<8x128xf32>
    %c0_11 = arith.constant 0 : index
    %c0_12 = arith.constant 0 : index
    %25 = vector.load %arg6[%c0_11, %c0_12] : memref<8x128xf32, #tpu.memory_space<vmem>>, vector<8x128xf32>
    tpu.vector_store %arg6[%c0_11, %c0_12], %24 {strides = array<i32>} : memref<8x128xf32, #tpu.memory_space<vmem>>, vector<8x128xf32>,
    %c0_i32_13 = arith.constant 0 : i32
    %26 = arith.cmpi eq, %arg1, %c0_i32_13 : i32
    %27 = arith.extui %26 : i1 to i32
    %c0_i32_14 = arith.constant 0 : i32
    %28 = arith.cmpi ne, %27, %c0_i32_14 : i32
    scf.if %28 {
      %c0_15 = arith.constant 0 : index
      %c0_16 = arith.constant 0 : index
      %29 = vector.load %arg6[%c0_15, %c0_16] : memref<8x128xf32, #tpu.memory_space<vmem>>, vector<8x128xf32>
      %c0_17 = arith.constant 0 : index
      %c0_18 = arith.constant 0 : index
      %30 = vector.load %arg5[%c0_17, %c0_18] : memref<8x128xf32, #tpu.memory_space<vmem>>, vector<8x128xf32>
      tpu.vector_store %arg5[%c0_17, %c0_18], %29 {strides = array<i32>} : memref<8x128xf32, #tpu.memory_space<vmem>>, vector<8x128xf32>,
    } else {
    }
    return
  }
  func.func @transform_0(%arg0: i32, %arg1: i32) -> (i32, i32) {
    %c1_i32 = arith.constant 1 : i32
    %0 = arith.muli %arg0, %c1_i32 : i32
    %1 = arith.addi %0, %arg1 : i32
    %c0_i32 = arith.constant 0 : i32
    %c0_i32_0 = arith.constant 0 : i32
    return %1, %c0_i32 : i32, i32
  }
  func.func @transform_1(%arg0: i32, %arg1: i32) -> (i32, i32) {
    %c1_i32 = arith.constant 1 : i32
    %0 = arith.muli %arg0, %c1_i32 : i32
    %1 = arith.addi %0, %arg1 : i32
    %c0_i32 = arith.constant 0 : i32
    %c0_i32_0 = arith.constant 0 : i32
    return %1, %c0_i32 : i32, i32
  }
  func.func @transform_2(%arg0: i32, %arg1: i32) -> (i32, i32) {
    %c1_i32 = arith.constant 1 : i32
    %0 = arith.muli %arg0, %c1_i32 : i32
    %1 = arith.addi %0, %arg1 : i32
    %c0_i32 = arith.constant 0 : i32
    %c0_i32_0 = arith.constant 0 : i32
    return %1, %c0_i32 : i32, i32
  }
  func.func @transform_3(%arg0: i32, %arg1: i32) -> (i32, i32) {
    %c0_i32 = arith.constant 0 : i32
    %c0_i32_0 = arith.constant 0 : i32
    return %arg0, %c0_i32 : i32, i32
  }
}

</mosaic_0001>

<bundles_post_ra>
// kernel: tpu_custom_call.1
= control target key start
LH: loop header
LB: loop body
LE: loop exit
PB: predicated region body
PF: predicated region fallthrough
CT: control target
= control target key end

     0   :  { %s1082_s0 = inlined_call_operand.hbm [shape: f32[16,512], index: 0, kind: input, shape index: {}]   ;;  %s1083_s1 = inlined_call_operand.hbm [shape: f32[16,512], index: 1, kind: input, shape index: {}]   ;;  %s1084_s2 = inlined_call_operand.hbm [shape: f32[16,512], index: 2, kind: input, shape index: {}]   ;;  %s1085_s3 = inlined_call_operand.hbm [shape: f32[16,128], index: 3, kind: output, shape index: {}]  }
   0x1   :  { %1091 = sst [smem:[#allocation16_spill]] %s1083_s1 }
   0x2   :  { %8 = vsyncpa [#allocation4], 0 }
   0x3   :  { %10 = vsyncpa [#allocation4 + $0x1], 0 }
   0x4   :  { %11 = vsyncpa [#allocation7], 0 }
   0x5   :  { %13 = vsyncpa [#allocation7 + $0x1], 0 }
   0x6   :  { %14 = vsyncpa [#allocation5], 0 }
   0x7   :  { %16 = vsyncpa [#allocation5 + $0x1], 0  ;;  %s817_s12 = smov 0   ;;  %s819_s13 = smov 0  }
   0x8   :  { %s821_s14 = smov 0   ;;  %s823_s15 = smov 0  }
   0x9   :  { %s825_s16 = smov 0   ;;  %s827_s17 = smov 0  }
   0xa LB: > { %1092 = sst [smem:[#allocation13_spill]] %s787_s16  ;;  %s848_s18 = sadd.s32 4294967295, %s791_s17   ;;  %s791_s17 = sphi %s827_s17, %s22_s17   ;;  %s787_s16 = sphi %s825_s16, %s1113_s16   ;;  %s783_s15 = sphi %s823_s15, %s1112_s15   ;;  %s779_s14 = sphi %s821_s14, %s1116_s14   ;;  %s775_s13 = sphi %s819_s13, %s1115_s13   ;;  %s771_s12 = sphi %s817_s12, %s1114_s12  }
   0xb   : > { %s503_s19 = sadd.s32 4294967294, %s791_s17   ;;  %s34_s20 = sadd.s32 1, %s787_s16 }
   0xc   : > { %s43_s21 = sadd.s32 1, %s779_s14  ;;  %p36_p0 = scmp.ge.s32.totalorder %s34_s20, 2 }
   0xd   : > { %p50_p1 = scmp.ne.s32.totalorder %s779_s14, %s775_s13  ;;  %p51_p2 = scmp.eq.s32.totalorder %s791_s17, 0 }
   0xe   : > { %p56_p3 = scmp.ne.s32.totalorder %s775_s13, %s771_s12  ;;  %s1118_s20 = smov (%p36_p0, %s34_s20), 0 }
   0xf   : > { %1093 = sst [smem:[#allocation14_spill]] %s1118_s20  ;;  %p860_p4 = por %p51_p2, %p50_p1 }
  0x10   : > { %p57_p5 = scmp.eq.s32.totalorder %s848_s18, 0  ;;  %s40_s23 = ssub.s32 %s787_s16, %s1118_s20 }
  0x11   : > { %p136_p6 = scmp.eq.s32.totalorder %s848_s18, 1  ;;  %p41_p7 = scmp.eq.s32.totalorder %s40_s23, 0 }
  0x12   : > { %p868_p8 = por %p57_p5, %p56_p3  ;;  %p142_p10 = scmp.eq.s32.totalorder %s503_s19, 1 }
  0x13   : > { %p872_p9 = por %p136_p6, %p50_p1  ;;  %p549_p13 = scmp.lt.s32.totalorder %s791_s17, 2 }
  0x14   : > { %s1095_s24 = scalar_select %p868_p8, 1, 0 }
  0x15   : > { %s1096_s25 = scalar_select %p872_p9, 1, 0 }
  0x16   : > { %s877_s26 = scalar_select %p41_p7, %s779_s14, %s43_s21  }
  0x17   : > { %p879_p11 = por %p142_p10, %p56_p3  ;;  %s162_s28 = sand.u32 1, %s779_s14  }
  0x18   : > { %1097 = sst [smem:[#allocation15_spill]] %s877_s26  ;;  %s888_s29 = sshll.u32 %s162_s28, 5 }
  0x19   : > { %s1098_s27 = scalar_select %p879_p11, 1, 0 }
  0x1a   : > { %s891_s30 = sshll.u32 %s787_s16, 9  ;;  %p895_p0 = pnand %p549_p13, %p860_p4 }
  0x1b   : > { %s182_s5 = sand.u32 1, %s791_s17   ;;  %s1100_s1 = sld [smem:[#allocation16_spill]] }
  0x1c   : > { %s1099_s4 = scalar_select %p895_p0, 1, 0 }
  0x1d   : > { %s186_s9 = scalar_lea.vmem [#allocation6], %s888_s29  ;;  %s911_s11 = scalar_lea.sflag [#allocation7], %s182_s5 }
  0x1e   : > { %s195_s10 = sshll.u32 %s186_s9, 4  ;;  %p917_p4 = pneg %p895_p0  ;;  %s908_s10 = int_to_ptr.vmem [resolvable:$true] %s195_s10 }
  0x21   : > { %s904_s8 = scalar_lea.hbm %s1100_s1, %s891_s30  ;;  %s620_s6 = scalar_lea.hbm %s1100_s1, 1024 }
  0x22   : > { %s615_s19 = scalar_lea.hbm %s904_s8, 512  ;;  %p621_p7 = scmp.lt.u32.totalorder %s904_s8, %s1100_s1 }
  0x23   : > { %p616_p3 = scmp.ne.s32.totalorder %s904_s8, %s615_s19  ;;  %p622_p10 = scmp.lt.u32.totalorder %s620_s6, %s615_s19 }
  0x24   : > { %p624_p12 = scmp.lt.u32.totalorder %s615_s19, %s904_s8 }
  0x25   : > { %p618_p5 = pnand %p917_p4, %p616_p3  ;;  %p623_p13 = por %p622_p10, %p621_p7 }
  0x27   : > { %p619_p6 = pneg %p618_p5  ;;  %p625_p1 = por %p624_p12, %p623_p13 }
  0x29   : > { %p626_p2 = pnand %p625_p1, %p619_p6 }
  0x2b   : > { %629 = shalt.err (!%p626_p2)
}
  0x2c   : > { %s630_s5 = scalar_lea.vmem %s908_s10, 512  ;;  %s793_s22 = smov [#allocation6]  }
  0x2d   : > { %p631_p3 = scmp.ne.s32.totalorder %s908_s10, %s630_s5  ;;  %s635_s23 = sshll.u32 %s793_s22, 4  ;;  %s636_s23 = int_to_ptr.vmem [resolvable:$false] %s635_s23 }
  0x2e   : > { %s637_s7 = scalar_lea.vmem %s636_s23, 1024  ;;  %p638_p9 = scmp.lt.s32.totalorder %s908_s10, %s636_s23 }
  0x2f   : > { %p633_p5 = pnand %p631_p3, %p917_p4  ;;  %p639_p8 = scmp.lt.s32.totalorder %s637_s7, %s630_s5 }
  0x31   : > { %p634_p11 = pneg %p633_p5  ;;  %p640_p7 = por %p639_p8, %p638_p9 }
  0x33   : > { %p641_p10 = pnand %p640_p7, %p634_p11 }
  0x35   : > { %644 = shalt.err (!%p641_p10)
}
  0x36   : > { %541 = dma.hbm_to_vmem [thread:$0]  (!%p895_p0), %s904_s8, 512, %s908_s10, %s911_s11  }
  0x37   : > { %p1102_p12 = scmp.lt.s32.totalorder %s791_s17, 3  ;;  %p1103_p1 = scmp.ge.s32.totalorder %s791_s17, 1 }
  0x38   : > { %s953_s5 = scalar_lea.hbm %s1082_s0, %s891_s30  ;;  %s166_s22 = scalar_lea.vmem [#allocation3], %s888_s29 }
  0x39   : > { %p945_p2 = pnand %p1103_p1, %p1102_p12  ;;  %s175_s23 = sshll.u32 %s166_s22, 4  ;;  %s956_s23 = int_to_ptr.vmem [resolvable:$true] %s175_s23 }
  0x3a   : > { %s962_s7 = scalar_lea.hbm %s1084_s2, %s891_s30  ;;  %s163_s1 = scalar_lea.sflag [#allocation4], %s162_s28 }
  0x3b   : > { %s1104_s19 = scalar_select %p945_p2, 1, 0 }
  0x3c   : > { %s645_s20 = scalar_lea.hbm %s953_s5, 512  ;;  %s650_s16 = scalar_lea.hbm %s1082_s0, 1024 }
  0x3d   : > { %p646_p8 = scmp.ne.s32.totalorder %s953_s5, %s645_s20  ;;  %p651_p6 = scmp.lt.u32.totalorder %s953_s5, %s1082_s0 }
  0x3e   : > { %p652_p13 = scmp.lt.u32.totalorder %s650_s16, %s645_s20  ;;  %p654_p5 = scmp.lt.u32.totalorder %s645_s20, %s953_s5 }
  0x3f   : > { %p648_p9 = pnand %p646_p8, %p917_p4 }
  0x40   : > { %p653_p3 = por %p652_p13, %p651_p6 }
  0x41   : > { %p649_p11 = pneg %p648_p9 }
  0x42   : > { %p655_p7 = por %p654_p5, %p653_p3 }
  0x44   : > { %p656_p10 = pnand %p655_p7, %p649_p11 }
  0x46   : > { %659 = shalt.err (!%p656_p10)
}
  0x47   : > { %s660_s28 = scalar_lea.vmem %s956_s23, 512  ;;  %s794_s30 = smov [#allocation3]  }
  0x48   : > { %p661_p12 = scmp.ne.s32.totalorder %s956_s23, %s660_s28  ;;  %s665_s8 = sshll.u32 %s794_s30, 4  ;;  %s666_s8 = int_to_ptr.vmem [resolvable:$false] %s665_s8 }
  0x49   : > { %s667_s26 = scalar_lea.vmem %s666_s8, 1024  ;;  %p668_p9 = scmp.lt.s32.totalorder %s956_s23, %s666_s8 }
  0x4a   : > { %p663_p1 = pnand %p661_p12, %p917_p4  ;;  %p669_p2 = scmp.lt.s32.totalorder %s667_s26, %s660_s28 }
  0x4c   : > { %p664_p8 = pneg %p663_p1  ;;  %p670_p6 = por %p669_p2, %p668_p9 }
  0x4e   : > { %p671_p13 = pnand %p670_p6, %p664_p8 }
  0x50   : > { %674 = shalt.err (!%p671_p13)
}
  0x51   : > { %538 = dma.hbm_to_vmem [thread:$0]  (!%p895_p0), %s953_s5, 512, %s956_s23, %s163_s1  }
  0x52   : > { %s206_s16 = scalar_lea.vmem [#allocation8], %s888_s29  ;;  %s675_s10 = scalar_lea.hbm %s962_s7, 512 }
  0x53   : > { %s215_s20 = sshll.u32 %s206_s16, 4  ;;  %p676_p11 = scmp.ne.s32.totalorder %s962_s7, %s675_s10  ;;  %s216_s20 = int_to_ptr.vmem [resolvable:$true] %s215_s20 }
  0x54   : > { %s680_s22 = scalar_lea.hbm %s1084_s2, 1024  ;;  %p681_p5 = scmp.lt.u32.totalorder %s962_s7, %s1084_s2 }
  0x55   : > { %p678_p2 = pnand %p676_p11, %p917_p4  ;;  %p682_p7 = scmp.lt.u32.totalorder %s680_s22, %s675_s10 }
  0x56   : > { %p684_p12 = scmp.lt.u32.totalorder %s675_s10, %s962_s7 }
  0x57   : > { %p679_p3 = pneg %p678_p2  ;;  %p683_p10 = por %p682_p7, %p681_p5 }
  0x59   : > { %p685_p1 = por %p684_p12, %p683_p10 }
  0x5b   : > { %p686_p8 = pnand %p685_p1, %p679_p3 }
  0x5d   : > { %689 = shalt.err (!%p686_p8)
}
  0x5e   : > { %s690_s1 = scalar_lea.vmem %s216_s20, 512  ;;  %s795_s29 = smov [#allocation8]  }
  0x5f   : > { %p691_p9 = scmp.ne.s32.totalorder %s216_s20, %s690_s1  ;;  %s695_s5 = sshll.u32 %s795_s29, 4  ;;  %s696_s5 = int_to_ptr.vmem [resolvable:$false] %s695_s5 }
  0x60   : > { %s697_s23 = scalar_lea.vmem %s696_s5, 1024  ;;  %p698_p11 = scmp.lt.s32.totalorder %s216_s20, %s696_s5 }
  0x61   : > { %p693_p6 = pnand %p691_p9, %p917_p4  ;;  %p699_p2 = scmp.lt.s32.totalorder %s697_s23, %s690_s1 }
  0x63   : > { %p694_p13 = pneg %p693_p6  ;;  %p700_p0 = por %p699_p2, %p698_p11 }
  0x65   : > { %p701_p5 = pnand %p700_p0, %p694_p13 }
  0x67   : > { %704 = shalt.err (!%p701_p5)
}
  0x68   : > { %p1105_p7 = scmp.ne.s32.totalorder %s1099_s4, 0  ;;  %p1106_p3 = scmp.ne.s32.totalorder %s1104_s19, 0 }
  0x69   : > { %s1009_s21 = sand.u32 (!%p1106_p3), 1, %s775_s13   ;;  %p1107_p0 = scmp.ne.s32.totalorder (!%p1106_p3), %s1095_s24, 0 }
  0x6a   : > { %544 = dma.hbm_to_vmem [thread:$0]  (!%p1105_p7), %s962_s7, 512, %s216_s20, %s911_s11  }
  0x6b   : > { %224 = sbr.rel (%p1106_p3) target bundleno = 319 (0x13f), region = 32  ;;  %s516_s8 = sshll.u32 (!%p1106_p3), %s1009_s21, 5 }
  0x6c   : > { %s227_s26 = scalar_lea.sflag (!%p1106_p3), [#allocation4], %s1009_s21  ;;  %s1013_s16 = scalar_lea.vmem (!%p1106_p3), [#allocation3], %s516_s8 }
  0x72   : > { %758 = dma.done.wait (%p1107_p0), %s227_s26, 512  }
  0x73   : > { %760 = vsyncadd (%p1107_p0), %s227_s26, 4294966784  ;;  %s235_s4 = sand.u32 1, %s848_s18   ;;  %s239_s19 = scalar_lea.vmem [#allocation6], %s516_s8 }
  0x74   : > { %s236_s11 = scalar_lea.sflag [#allocation7], %s235_s4 }
  0x75   : > { %762 = dma.done.wait (%p1107_p0), %s236_s11, 1024  }
  0x76   : > { %764 = vsyncadd (%p1107_p0), %s236_s11, 4294966272  ;;  %v293_v0 = vld [vmem:[%s239_s19] sm:$0xff]  ;;  %v294_v1 = vld [vmem:[%s239_s19 + $0x8] sm:$0xff]  ;;  %s248_s18 = scalar_lea.vmem [#allocation8], %s516_s8  ;;  %s519_s24 = sshll.u32 %s1009_s21, 3 }
  0x77   : > { %v295_v2 = vld [vmem:[%s239_s19 + $0x10] sm:$0xff]  ;;  %v296_v3 = vld [vmem:[%s239_s19 + $0x18] sm:$0xff]  ;;  %599 = vrcp.f32 %v293_v0  ;;  %v289_v5 = vld [vmem:[%s1013_s16] sm:$0xff]  ;;  %s521_s7 = sshll.u32 %s783_s15, 7  ;;  %s280_s20 = scalar_lea.vmem [#allocation9], %s519_s24 }
  0x78   : > { %601 = vrcp.f32 %v294_v1  ;;  %v297_v6 = vld [vmem:[%s248_s18] sm:$0xff]  ;;  %v290_v8 = vld [vmem:[%s1013_s16 + $0x8] sm:$0xff]  ;;  %v291_v12 = vld [vmem:[%s1013_s16 + $0x10] sm:$0xff]  ;;  %s378_s10 = sshll.u32 %s280_s20, 4  ;;  %s1033_s22 = scalar_lea.hbm %s1085_s3, %s521_s7  ;;  %s1035_s10 = int_to_ptr.vmem [resolvable:$true] %s378_s10 }
  0x79   : > { %603 = vrcp.f32 %v295_v2  ;;  %v298_v9 = vld [vmem:[%s248_s18 + $0x8] sm:$0xff]  ;;  %v299_v13 = vld [vmem:[%s248_s18 + $0x10] sm:$0xff]  ;;  %v292_v16 = vld [vmem:[%s1013_s16 + $0x18] sm:$0xff]  ;;  %v317_v20 = vsub.f32 %v297_v6, %v289_v5  ;;  %s365_s28 = scalar_lea.sflag [#allocation5], %s1009_s21  ;;  %s705_s30 = scalar_lea.vmem %s1035_s10, 128 }
  0x7a   : > { %605 = vrcp.f32 %v296_v3  ;;  %v300_v17 = vld [vmem:[%s248_s18 + $0x18] sm:$0xff]  ;;  %v318_v23 = vsub.f32 %v298_v9, %v290_v8  ;;  %v319_v26 = vsub.f32 %v299_v13, %v291_v12  ;;  %p706_p4 = scmp.ne.s32.totalorder %s1035_s10, %s705_s30  ;;  %p1108_p10 = scmp.ne.s32.totalorder %s1096_s25, 0 }
  0x7b   : > { %607 = vlog2.f32 %v293_v0  ;;  %v320_v30 = vsub.f32 %v300_v17, %v292_v16  ;;  %s796_s15 = smov [#allocation9]  }
  0x7c   : > { %609 = vlog2.f32 %v294_v1  ;;  %p707_p12 = pnand %p706_p4, %p1108_p10  ;;  %s709_s1 = sshll.u32 %s796_s15, 4  ;;  %s710_s1 = int_to_ptr.vmem [resolvable:$false] %s709_s1 }
  0x7d   : > { %611 = vlog2.f32 %v295_v2  ;;  %s711_s29 = scalar_lea.vmem %s710_s1, 256  ;;  %p712_p8 = scmp.lt.s32.totalorder %s1035_s10, %s710_s1 }
  0x7e   : > { %613 = vlog2.f32 %v296_v3  ;;  %p708_p1 = pneg %p707_p12  ;;  %p713_p9 = scmp.lt.s32.totalorder %s711_s29, %s705_s30 }
  0x80   : > { %p714_p6 = por %p713_p9, %p712_p8 }
  0x81   : > { %v600_v4 = vpop.eup %599 }
  0x82   : > { %v602_v7 = vpop.eup %601  ;;  %v305_v10 = vmul.f32 %v600_v4, %v293_v0  ;;  %p715_p13 = pnand %p714_p6, %p708_p1 }
  0x83   : > { %v604_v11 = vpop.eup %603  ;;  %v306_v14 = vmul.f32 %v602_v7, %v294_v1 }
  0x84   : > { %v606_v15 = vpop.eup %605  ;;  %v307_v18 = vmul.f32 %v604_v11, %v295_v2  ;;  %v309_v19 = vsub.f32 2.0, %v305_v10 }
  0x85   : > { %v308_v21 = vmul.f32 %v606_v15, %v296_v3  ;;  %v310_v22 = vsub.f32 2.0, %v306_v14  ;;  %v608_v27 = vpop.eup %607 }
  0x86   : > { %v311_v24 = vsub.f32 2.0, %v307_v18  ;;  %v313_v25 = vmul.f32 %v600_v4, %v309_v19  ;;  %v610_v31 = vpop.eup %609  ;;  %v334_v40 = vmul.f32 0.6931472, %v608_v27 }
  0x87   : > { %v312_v28 = vsub.f32 2.0, %v308_v21  ;;  %v314_v29 = vmul.f32 %v602_v7, %v310_v22  ;;  %v612_v34 = vpop.eup %611  ;;  %v336_v43 = vmul.f32 0.6931472, %v610_v31 }
  0x88   : > { %v315_v32 = vmul.f32 %v604_v11, %v311_v24  ;;  %v321_v33 = vmul.f32 %v317_v20, %v313_v25  ;;  %v614_v37 = vpop.eup %613  ;;  %v338_v46 = vmul.f32 0.6931472, %v612_v34 }
  0x89   : > { %v316_v35 = vmul.f32 %v606_v15, %v312_v28  ;;  %v322_v36 = vmul.f32 %v318_v23, %v314_v29  ;;  %v340_v49 = vmul.f32 0.6931472, %v614_v37 }
  0x8a   : > { %v323_v38 = vmul.f32 %v319_v26, %v315_v32  ;;  %v325_v39 = vmul.f32 %v321_v33, %v321_v33 }
  0x8b   : > { %v324_v41 = vmul.f32 %v320_v30, %v316_v35  ;;  %v326_v42 = vmul.f32 %v322_v36, %v322_v36 }
  0x8c   : > { %v327_v44 = vmul.f32 %v323_v38, %v323_v38  ;;  %v329_v45 = vmul.f32 -0.5, %v325_v39 }
  0x8d   : > { %v328_v47 = vmul.f32 %v324_v41, %v324_v41  ;;  %v330_v48 = vmul.f32 -0.5, %v326_v42 }
  0x8e   : > { %v331_v50 = vmul.f32 -0.5, %v327_v44  ;;  %v341_v51 = vsub.f32 %v329_v45, %v334_v40 }
  0x8f   : > { %v332_v52 = vmul.f32 -0.5, %v328_v47  ;;  %v342_v53 = vsub.f32 %v330_v48, %v336_v43 }
  0x90   : > { %v343_v54 = vsub.f32 %v331_v50, %v338_v46 }
  0x91   : > { %v344_v55 = vsub.f32 %v332_v52, %v340_v49  ;;  %v345_v56 = vadd.f32 %v342_v53, %v341_v51 }
  0x93   : > { %v346_v57 = vadd.f32 %v345_v56, %v343_v54 }
  0x95   : > { %v347_v58 = vadd.f32 %v346_v57, %v344_v55 }
  0x97   : > { %348 = vadd.xlane.f32.xlu0 %v347_v58 }
 0x124   : > { %v349_v59 = vpop.xlane.xlu0 %348 }
 0x125   : > { %v350_v60 = vrot.slane %v349_v59, 4 }
 0x127   : > { %v351_v61 = vadd.f32 %v350_v60, %v349_v59 }
 0x129   : > { %v352_v62 = vrot.slane %v351_v61, 2 }
 0x12b   : > { %v353_v63 = vadd.f32 %v352_v62, %v351_v61 }
 0x12d   : > { %v354_v0 = vrot.slane %v353_v63, 1 }
 0x12f   : > { %v355_v1 = vadd.f32 %v354_v0, %v353_v63 }
 0x131   : > { %363 = vst [vmem:[%s280_s20] sm:$0xff] %v355_v1 }
 0x132   : > { %718 = shalt.err (!%p715_p13)
}
 0x133   : > { %s719_s5 = scalar_lea.hbm %s1033_s22, 128  ;;  %s723_s8 = scalar_lea.hbm %s1085_s3, 256 }
 0x134   : > { %p720_p11 = scmp.ne.s32.totalorder %s1033_s22, %s719_s5  ;;  %p724_p7 = scmp.lt.u32.totalorder %s1033_s22, %s1085_s3 }
 0x135   : > { %p725_p3 = scmp.lt.u32.totalorder %s723_s8, %s719_s5  ;;  %p727_p4 = scmp.lt.u32.totalorder %s719_s5, %s1033_s22 }
 0x136   : > { %p721_p2 = pnand %p720_p11, %p1108_p10 }
 0x137   : > { %p726_p0 = por %p725_p3, %p724_p7 }
 0x138   : > { %p722_p5 = pneg %p721_p2 }
 0x139   : > { %p728_p12 = por %p727_p4, %p726_p0 }
 0x13b   : > { %p729_p1 = pnand %p728_p12, %p722_p5 }
 0x13d   : > { %732 = shalt.err (!%p729_p1)
}
 0x13e   : > { %533 = dma.vmem_to_hbm [thread:$0]  (%p1108_p10), %s1035_s10, 128, %s1033_s22, %s365_s28  }
 0x13f PF: > { %s390_s4 = sand.u32 1, %s771_s12   ;;  %p1109_p8 = scmp.ne.s32.totalorder %s1098_s27, 0 }
 0x140   : > { %p1110_p9 = scmp.ge.s32.totalorder %s791_s17, 2  ;;  %s391_s11 = scalar_lea.sflag [#allocation5], %s390_s4 }
 0x142   : > { %p546_p6 = pnand %p1110_p9, %p1109_p8 }
 0x144   : > { %766 = dma.done.wait (!%p546_p6), %s391_s11, 128  }
 0x145   : > { %768 = vsyncadd (!%p546_p6), %s391_s11, 4294967168  ;;  %s22_s17 = sadd.s32 1, %s791_s17   ;;  %s1111_s25 = sld [smem:[#allocation15_spill]] }
 0x146   : > { %p19_p13 = scmp.ge.s32.totalorder %s22_s17, 4   ;;  %s1112_s15 = sld [smem:[#allocation13_spill]] }
 0x147   : > { %s1113_s16 = sld [smem:[#allocation14_spill]]  ;;  %s1114_s12 = smov %s775_s13 }
 0x148   : > { %s1115_s13 = smov %s779_s14  ;;  %21 = sbr.rel (!%p19_p13) target bundleno = 10 (0xa), region = 109 }
 0x14b   : > { %s1116_s14 = smov %s1111_s25 }
 0x14f   :  { %396 = vsyncpa [#allocation4], 1 }
 0x150   :  { %398 = vsyncpa [#allocation4 + $0x1], 1 }
 0x151   :  { %399 = vsyncpa [#allocation7], 1 }
 0x152   :  { %401 = vsyncpa [#allocation7 + $0x1], 1 }
 0x153   :  { %402 = vsyncpa [#allocation5], 1 }
 0x154   :  { %404 = vsyncpa [#allocation5 + $0x1], 1 }

</bundles_post_ra>
